<compile_context>
chip_gen: v7x
topology: tpu7x:2x2x1
jax: 0.10.0
libtpu: 0.0.40
codegen_flags: <defaults>
</compile_context>

<pallas_src>
import jax
import jax.numpy as jnp
from jax.experimental import pallas as pl
from jax.experimental.pallas import tpu as pltpu


def _gcn_kernel(x_ref, adj_ref, w_ref, o_ref):
    # x_ref:   (V, D_in)   node features for one batch element
    # adj_ref: (V, V)      adjacency for one batch element
    # w_ref:   (D_in, D_out)
    # o_ref:   (V, D_out)
    xw = jnp.dot(x_ref[...], w_ref[...], preferred_element_type=jnp.float32)
    axw = jnp.dot(adj_ref[...], xw, preferred_element_type=jnp.float32)

    y = jnp.maximum(axw, 0.0)                                   # ReLU
    col_mean = jnp.mean(y, axis=0, keepdims=True) + 1e-6        # (1, D_out)
    y_norm = y * (1.0 / col_mean)                               # divide by col mean
    # numerically stable softplus: log(1 + exp(z)) = max(z, 0) + log1p(exp(-|z|))
    out = jnp.maximum(y_norm, 0.0) + jnp.log1p(jnp.exp(-jnp.abs(y_norm)))
    o_ref[...] = out.astype(o_ref.dtype)


def gcn_forward(x, adj, kernel_w):
    """x: (B, V, D_in), adj: (B, V, V), kernel_w: (D_in, D_out) -> (B, V, D_out)."""
    B, V, D_in = x.shape
    D_out = kernel_w.shape[1]
    assert adj.shape == (B, V, V)
    assert kernel_w.shape == (D_in, D_out)

    return pl.pallas_call(
        _gcn_kernel,
        out_shape=jax.ShapeDtypeStruct((B, V, D_out), x.dtype),
        grid_spec=pltpu.PrefetchScalarGridSpec(
            num_scalar_prefetch=0,
            grid=(B,),
            in_specs=[
                # leading batch dim squeezed out of the kernel Ref (block dim None)
                pl.BlockSpec((None, V, D_in), lambda b: (b, 0, 0)),
                pl.BlockSpec((None, V, V), lambda b: (b, 0, 0)),
                pl.BlockSpec((D_in, D_out), lambda b: (0, 0)),
            ],
            out_specs=pl.BlockSpec((None, V, D_out), lambda b: (b, 0, 0)),
        ),
        compiler_params=pltpu.CompilerParams(
            dimension_semantics=("parallel",),
        ),
    )(x, adj, kernel_w)


def _reference_forward(x, adj, kernel_w):
    """Pure-JAX reference matching the PyTorch GCN.forward (x is not None path)."""
    xw = jnp.einsum("bvi,io->bvo", x, kernel_w)
    axw = jnp.einsum("bvu,buo->bvo", adj, xw)
    y_relu = jnp.maximum(axw, 0.0)
    col_mean = jnp.mean(y_relu, axis=-2, keepdims=True) + 1e-6
    y_norm = y_relu / col_mean
    return jnp.maximum(y_norm, 0.0) + jnp.log1p(jnp.exp(-jnp.abs(y_norm)))


if __name__ == "__main__":
    # Module hyper-params: GCN(in_dim=32, out_dim=32) on graphs with V=16 nodes.
    B, V, D_in, D_out = 2, 16, 32, 32

    key = jax.random.PRNGKey(0)
    k_x, k_a, k_w = jax.random.split(key, 3)

    x = jax.random.normal(k_x, (B, V, D_in), dtype=jnp.float32)
    # GCN-like (row-stochastic, non-negative) adjacency
    adj_logits = jax.random.normal(k_a, (B, V, V), dtype=jnp.float32)
    adj = jax.nn.softmax(adj_logits, axis=-1)
    # xavier-normal-ish init for the kernel parameter
    w_std = (2.0 / (D_in + D_out)) ** 0.5
    kernel_w = w_std * jax.random.normal(k_w, (D_in, D_out), dtype=jnp.float32)

    out = gcn_forward(x, adj, kernel_w)
    out = jax.block_until_ready(out)

    ref = _reference_forward(x, adj, kernel_w)
    ref = jax.block_until_ready(ref)

    assert out.shape == ref.shape, (out.shape, ref.shape)
    assert jnp.allclose(out, ref, atol=1e-4, rtol=1e-4), "mismatch vs reference"
    print("KERNEL_OK")
</pallas_src>

<mosaic_0001>
module attributes {stable_mosaic.version = 11 : i64} {
  func.func @_gcn_kernel(%arg0: i32, %arg1: memref<1x16x32xf32, #tpu.memory_space<vmem>>, %arg2: memref<1x16x16xf32, #tpu.memory_space<vmem>>, %arg3: memref<32x32xf32, #tpu.memory_space<vmem>>, %arg4: memref<1x16x32xf32, #tpu.memory_space<vmem>>) attributes {dimension_semantics = [#tpu.dimension_semantics<parallel>], iteration_bounds = array<i64: 2>, scalar_prefetch = 0 : i64, scratch_operands = 0 : i64, tpu.core_type = #tpu.core_type<tc>, window_params = [{transform_indices = @transform_0, window_bounds = array<i64: 1, 16, 32>}, {transform_indices = @transform_1, window_bounds = array<i64: 1, 16, 16>}, {pipeline_mode = #tpu.pipeline_mode<synchronous>, transform_indices = @transform_2, window_bounds = array<i64: 32, 32>}, {transform_indices = @transform_3, window_bounds = array<i64: 1, 16, 32>}]} {
    %c0 = arith.constant 0 : index
    %c0_0 = arith.constant 0 : index
    %c0_1 = arith.constant 0 : index
    %0 = vector.load %arg1[%c0, %c0_0, %c0_1] : memref<1x16x32xf32, #tpu.memory_space<vmem>>, vector<1x16x32xf32>
    %1 = vector.shape_cast %0 : vector<1x16x32xf32> to vector<16x32xf32>
    %c0_2 = arith.constant 0 : index
    %c0_3 = arith.constant 0 : index
    %2 = vector.load %arg3[%c0_2, %c0_3] : memref<32x32xf32, #tpu.memory_space<vmem>>, vector<32x32xf32>
    %cst = arith.constant dense<0.000000e+00> : vector<16x32xf32>
    %3 = tpu.matmul %1, %2, %cst {dimension_numbers = #tpu.dot_dimension_numbers<[1], [0], [0], [1], [0, 0, 1, 1], [], []>} : vector<16x32xf32>, vector<32x32xf32>, vector<16x32xf32> -> vector<16x32xf32>
    %c0_4 = arith.constant 0 : index
    %c0_5 = arith.constant 0 : index
    %c0_6 = arith.constant 0 : index
    %4 = vector.load %arg2[%c0_4, %c0_5, %c0_6] : memref<1x16x16xf32, #tpu.memory_space<vmem>>, vector<1x16x16xf32>
    %5 = vector.shape_cast %4 : vector<1x16x16xf32> to vector<16x16xf32>
    %cst_7 = arith.constant dense<0.000000e+00> : vector<16x32xf32>
    %6 = tpu.matmul %5, %3, %cst_7 {dimension_numbers = #tpu.dot_dimension_numbers<[1], [0], [0], [1], [0, 0, 1, 1], [], []>} : vector<16x16xf32>, vector<16x32xf32>, vector<16x32xf32> -> vector<16x32xf32>
    %cst_8 = arith.constant 0.000000e+00 : f32
    %7 = vector.broadcast %cst_8 : f32 to vector<16x32xf32>
    %8 = arith.maximumf %6, %7 : vector<16x32xf32>
    %cst_9 = arith.constant dense<0.000000e+00> : vector<32xf32>
    %9 = vector.multi_reduction <add>, %8, %cst_9 [0] : vector<16x32xf32> to vector<32xf32>
    %10 = vector.shape_cast %9 : vector<32xf32> to vector<1x32xf32>
    %cst_10 = arith.constant 1.600000e+01 : f32
    %11 = vector.broadcast %cst_10 : f32 to vector<1x32xf32>
    %12 = arith.divf %10, %11 : vector<1x32xf32>
    %cst_11 = arith.constant 9.99999997E-7 : f32
    %13 = vector.broadcast %cst_11 : f32 to vector<1x32xf32>
    %14 = arith.addf %12, %13 : vector<1x32xf32>
    %cst_12 = arith.constant 1.000000e+00 : f32
    %15 = vector.broadcast %cst_12 : f32 to vector<1x32xf32>
    %16 = arith.divf %15, %14 : vector<1x32xf32>
    %17 = vector.broadcast %16 : vector<1x32xf32> to vector<16x32xf32>
    %18 = arith.mulf %8, %17 : vector<16x32xf32>
    %cst_13 = arith.constant 0.000000e+00 : f32
    %19 = vector.broadcast %cst_13 : f32 to vector<16x32xf32>
    %20 = arith.maximumf %18, %19 : vector<16x32xf32>
    %21 = math.absf %18 : vector<16x32xf32>
    %cst_14 = arith.constant 0.000000e+00 : f32
    %22 = vector.broadcast %cst_14 : f32 to vector<16x32xf32>
    %23 = arith.subf %22, %21 : vector<16x32xf32>
    %24 = math.exp %23 : vector<16x32xf32>
    %25 = math.log1p %24 : vector<16x32xf32>
    %26 = arith.addf %20, %25 : vector<16x32xf32>
    %c0_15 = arith.constant 0 : index
    %c0_16 = arith.constant 0 : index
    %c0_17 = arith.constant 0 : index
    %27 = vector.load %arg4[%c0_15, %c0_16, %c0_17] : memref<1x16x32xf32, #tpu.memory_space<vmem>>, vector<1x16x32xf32>
    %28 = vector.shape_cast %27 : vector<1x16x32xf32> to vector<16x32xf32>
    %29 = vector.shape_cast %26 : vector<16x32xf32> to vector<1x16x32xf32>
    tpu.vector_store %arg4[%c0_15, %c0_16, %c0_17], %29 {strides = array<i32>} : memref<1x16x32xf32, #tpu.memory_space<vmem>>, vector<1x16x32xf32>,
    return
  }
  func.func @transform_0(%arg0: i32) -> (i32, i32, i32) {
    %c0_i32 = arith.constant 0 : i32
    %c0_i32_0 = arith.constant 0 : i32
    %c0_i32_1 = arith.constant 0 : i32
    return %arg0, %c0_i32, %c0_i32_0 : i32, i32, i32
  }
  func.func @transform_1(%arg0: i32) -> (i32, i32, i32) {
    %c0_i32 = arith.constant 0 : i32
    %c0_i32_0 = arith.constant 0 : i32
    %c0_i32_1 = arith.constant 0 : i32
    return %arg0, %c0_i32, %c0_i32_0 : i32, i32, i32
  }
  func.func @transform_2(%arg0: i32) -> (i32, i32) {
    %c0_i32 = arith.constant 0 : i32
    %c0_i32_0 = arith.constant 0 : i32
    %c0_i32_1 = arith.constant 0 : i32
    return %c0_i32, %c0_i32_0 : i32, i32
  }
  func.func @transform_3(%arg0: i32) -> (i32, i32, i32) {
    %c0_i32 = arith.constant 0 : i32
    %c0_i32_0 = arith.constant 0 : i32
    %c0_i32_1 = arith.constant 0 : i32
    return %arg0, %c0_i32, %c0_i32_0 : i32, i32, i32
  }
}

</mosaic_0001>

<bundles_post_ra>
// kernel: tpu_custom_call.1
= control target key start
LH: loop header
LB: loop body
LE: loop exit
PB: predicated region body
PF: predicated region fallthrough
CT: control target
= control target key end

     0   :  { %s1183_s0 = inlined_call_operand.hbm [shape: f32[2,16,32], index: 0, kind: input, shape index: {}]   ;;  %s1184_s1 = inlined_call_operand.hbm [shape: f32[2,16,16], index: 1, kind: input, shape index: {}]   ;;  %s1185_s2 = inlined_call_operand.hbm [shape: f32[32,32], index: 2, kind: input, shape index: {}]   ;;  %s1186_s3 = inlined_call_operand.hbm [shape: f32[2,16,32], index: 3, kind: output, shape index: {}]  }
   0x1   :  { %1194 = sst [smem:[#allocation13_spill]] %s1183_s0 }
   0x2   :  { %1195 = sst [smem:[#allocation14_spill]] %s1185_s2 }
   0x3   :  { %8 = vsyncpa [#allocation3], 0 }
   0x4   :  { %10 = vsyncpa [#allocation3 + $0x1], 0 }
   0x5   :  { %11 = vsyncpa [#allocation6], 0 }
   0x6   :  { %13 = vsyncpa [#allocation6 + $0x1], 0 }
   0x7   :  { %14 = vsyncpa [#allocation4], 0 }
   0x8   :  { %16 = vsyncpa [#allocation4 + $0x1], 0  ;;  %s919_s12 = smov 0   ;;  %s921_s13 = smov 0  }
   0x9   :  { %s923_s14 = smov 0   ;;  %s925_s15 = smov 0  }
   0xa LB: > { %s940_s16 = sadd.s32 4294967295, %s889_s15   ;;  %s584_s17 = sadd.s32 4294967294, %s889_s15   ;;  %s889_s15 = sphi %s925_s15, %s1216_s15   ;;  %s885_s14 = sphi %s923_s14, %s1215_s14   ;;  %s881_s13 = sphi %s921_s13, %s1214_s13   ;;  %s877_s12 = sphi %s919_s12, %s1213_s12  }
   0xb   : > { %p42_p0 = scmp.ne.s32.totalorder %s881_s13, %s877_s12  ;;  %p1187_p1 = scmp.eq.s32.totalorder %s940_s16, 0 }
   0xc   : > { %p119_p3 = scmp.eq.s32.totalorder %s584_s17, 1  ;;  %p585_p5 = scmp.ge.s32.totalorder %s889_s15, 1 }
   0xd   : > { %p949_p4 = por %p1187_p1, %p42_p0  ;;  %p126_p7 = scmp.lt.s32.totalorder %s889_s15, 3 }
   0xe   : > { %p954_p6 = por %p119_p3, %p42_p0  ;;  %s891_s21 = smov [#allocation7]  }
   0xf   : > { %s1196_s18 = scalar_select %p949_p4, 1, 0 }
  0x10   : > { %s1197_s19 = scalar_select %p954_p6, 1, 0 }
  0x11   : > { %p959_p8 = pnand %p585_p5, %p126_p7  ;;  %s138_s22 = sshll.u32 %s891_s21, 4  ;;  %s963_s22 = int_to_ptr.vmem [resolvable:$true] %s138_s22 }
  0x12   : > { %s975_s24 = sadd.s32 1, %s889_s15   ;;  %s29_s25 = sadd.s32 1, %s885_s14 }
  0x13   : > { %s1198_s20 = scalar_select %p959_p8, 1, 0 }
  0x14   : > { %p661_p9 = pneg %p959_p8  ;;  %s26_s26 = ssub.s32 %s889_s15, %s975_s24 }
  0x15   : > { %s1200_s2 = sld [smem:[#allocation14_spill]] }
  0x16   : > { %p970_p11 = pnand %p661_p9, %p1187_p1 }
  0x18   : > { %p729_p13 = pneg %p970_p11 }
  0x1b   : > { %s727_s29 = scalar_lea.hbm %s1200_s2, 512 }
  0x1c   : > { %p728_p12 = scmp.ne.s32.totalorder %s1200_s2, %s727_s29  ;;  %p734_p5 = scmp.lt.u32.totalorder %s727_s29, %s1200_s2 }
  0x1e   : > { %p730_p0 = pnand %p729_p13, %p728_p12 }
  0x20   : > { %p731_p3 = pneg %p730_p0 }
  0x22   : > { %p736_p7 = pnand %p734_p5, %p731_p3 }
  0x24   : > { %739 = shalt.err (!%p736_p7)
}
  0x25   : > { %s740_s7 = scalar_lea.vmem %s963_s22, 512  ;;  %p748_p2 = scmp.lt.s32.totalorder %s963_s22, %s963_s22 }
  0x26   : > { %p741_p9 = scmp.ne.s32.totalorder %s963_s22, %s740_s7  ;;  %p749_p6 = scmp.lt.s32.totalorder %s740_s7, %s740_s7 }
  0x28   : > { %p743_p10 = pnand %p741_p9, %p729_p13  ;;  %p750_p4 = por %p749_p6, %p748_p2 }
  0x2a   : > { %p744_p1 = pneg %p743_p10 }
  0x2c   : > { %p751_p8 = pnand %p750_p4, %p744_p1 }
  0x2e   : > { %754 = shalt.err (!%p751_p8)
}
  0x2f   : > { %s1190_s8 = smov 128   ;;  %s1192_s9 = smov 8  }
  0x30   : > { %664 = dma.hbm_to_vmem [thread:$0]  (!%p970_p11), %s1200_s2, 512, %s963_s22, [#allocation6], %s1190_s8, %s1190_s8, %s1192_s9  }
  0x31   : > { %p27_p1 = scmp.eq.s32.totalorder %s26_s26, 0  ;;  %p36_p2 = scmp.ne.s32.totalorder %s885_s14, %s881_s13 }
  0x32   : > { %p37_p4 = scmp.eq.s32.totalorder %s889_s15, 0  ;;  %p677_p6 = scmp.lt.s32.totalorder %s889_s15, 2 }
  0x33   : > { %s1009_s17 = scalar_select %p27_p1, %s885_s14, %s29_s25  }
  0x34   : > { %p38_p8 = por %p37_p4, %p36_p2  ;;  %p1201_p10 = scmp.eq.s32.totalorder %s940_s16, 1 }
  0x35   : > { %s152_s23 = sand.u32 1, %s885_s14   ;;  %s608_s27 = sshll.u32 %s889_s15, 8 }
  0x36   : > { %p1013_p12 = por %p1201_p10, %p36_p2  ;;  %s1019_s28 = sshll.u32 %s152_s23, 4 }
  0x37   : > { %s1203_s0 = sld [smem:[#allocation13_spill]]  ;;  %s156_s25 = scalar_lea.vmem [#allocation2], %s1019_s28 }
  0x38   : > { %s163_s26 = sshll.u32 %s156_s25, 4  ;;  %p1027_p11 = pnand %p677_p6, %p38_p8  ;;  %s1031_s26 = int_to_ptr.vmem [resolvable:$true] %s163_s26 }
  0x39   : > { %s1036_s7 = scalar_lea.hbm %s1184_s1, %s608_s27  ;;  %s1038_s10 = scalar_lea.sflag [#allocation3], %s152_s23 }
  0x3a   : > { %p757_p0 = pneg %p1027_p11 }
  0x3d   : > { %s1024_s22 = scalar_lea.hbm %s1203_s0, %s608_s27  ;;  %s760_s25 = scalar_lea.hbm %s1203_s0, 512 }
  0x3e   : > { %s755_s11 = scalar_lea.hbm %s1024_s22, 256  ;;  %p761_p7 = scmp.lt.u32.totalorder %s1024_s22, %s1203_s0 }
  0x3f   : > { %p756_p13 = scmp.ne.s32.totalorder %s1024_s22, %s755_s11  ;;  %p762_p9 = scmp.lt.u32.totalorder %s760_s25, %s755_s11 }
  0x40   : > { %p764_p2 = scmp.lt.u32.totalorder %s755_s11, %s1024_s22 }
  0x41   : > { %p758_p3 = pnand %p757_p0, %p756_p13  ;;  %p763_p1 = por %p762_p9, %p761_p7 }
  0x43   : > { %p759_p5 = pneg %p758_p3  ;;  %p765_p4 = por %p764_p2, %p763_p1 }
  0x45   : > { %p766_p6 = pnand %p765_p4, %p759_p5 }
  0x47   : > { %769 = shalt.err (!%p766_p6)
}
  0x48   : > { %s770_s23 = scalar_lea.vmem %s1031_s26, 256  ;;  %s894_s27 = smov [#allocation2]  }
  0x49   : > { %p771_p8 = scmp.ne.s32.totalorder %s1031_s26, %s770_s23  ;;  %s775_s5 = sshll.u32 %s894_s27, 4  ;;  %s776_s5 = int_to_ptr.vmem [resolvable:$false] %s775_s5 }
  0x4a   : > { %s777_s8 = scalar_lea.vmem %s776_s5, 512  ;;  %p778_p3 = scmp.lt.s32.totalorder %s1031_s26, %s776_s5 }
  0x4b   : > { %p773_p10 = pnand %p771_p8, %p757_p0  ;;  %p779_p7 = scmp.lt.s32.totalorder %s777_s8, %s770_s23 }
  0x4d   : > { %p774_p13 = pneg %p773_p10  ;;  %p780_p9 = por %p779_p7, %p778_p3 }
  0x4f   : > { %p781_p1 = pnand %p780_p9, %p774_p13 }
  0x51   : > { %784 = shalt.err (!%p781_p1)
}
  0x52   : > { %s1205_s9 = smov 8   ;;  %s1206_s6 = smov 128  }
  0x53   : > { %668 = dma.hbm_to_vmem [thread:$0]  (!%p1027_p11), %s1024_s22, 256, %s1031_s26, %s1038_s10, %s1206_s6, %s1206_s6, %s1205_s9  }
  0x54   : > { %s177_s11 = scalar_lea.vmem [#allocation5], %s1019_s28  ;;  %s173_s30 = sand.u32 1, %s889_s15  }
  0x55   : > { %s184_s29 = sshll.u32 %s177_s11, 4  ;;  %s1073_s25 = scalar_lea.sflag [#allocation6], %s173_s30  ;;  %s1071_s29 = int_to_ptr.vmem [resolvable:$true] %s184_s29 }
  0x56   : > { %s785_s23 = scalar_lea.hbm %s1036_s7, 256  ;;  %s790_s8 = scalar_lea.hbm %s1184_s1, 512 }
  0x57   : > { %p786_p5 = scmp.ne.s32.totalorder %s1036_s7, %s785_s23  ;;  %p791_p6 = scmp.lt.u32.totalorder %s1036_s7, %s1184_s1 }
  0x58   : > { %p792_p8 = scmp.lt.u32.totalorder %s790_s8, %s785_s23  ;;  %p794_p13 = scmp.lt.u32.totalorder %s785_s23, %s1036_s7 }
  0x59   : > { %p788_p2 = pnand %p786_p5, %p757_p0 }
  0x5a   : > { %p793_p10 = por %p792_p8, %p791_p6 }
  0x5b   : > { %p789_p4 = pneg %p788_p2 }
  0x5c   : > { %p795_p3 = por %p794_p13, %p793_p10 }
  0x5e   : > { %p796_p7 = pnand %p795_p3, %p789_p4 }
  0x60   : > { %799 = shalt.err (!%p796_p7)
}
  0x61   : > { %s800_s28 = scalar_lea.vmem %s1071_s29, 256  ;;  %s895_s22 = smov [#allocation5]  }
  0x62   : > { %p801_p9 = scmp.ne.s32.totalorder %s1071_s29, %s800_s28  ;;  %s805_s26 = sshll.u32 %s895_s22, 4  ;;  %s806_s26 = int_to_ptr.vmem [resolvable:$false] %s805_s26 }
  0x63   : > { %s807_s0 = scalar_lea.vmem %s806_s26, 512  ;;  %p808_p2 = scmp.lt.s32.totalorder %s1071_s29, %s806_s26 }
  0x64   : > { %p803_p1 = pnand %p801_p9, %p757_p0  ;;  %p809_p6 = scmp.lt.s32.totalorder %s807_s0, %s800_s28 }
  0x66   : > { %p804_p5 = pneg %p803_p1  ;;  %p810_p8 = por %p809_p6, %p808_p2 }
  0x68   : > { %p811_p10 = pnand %p810_p8, %p804_p5 }
  0x6a   : > { %814 = shalt.err (!%p811_p10)
}
  0x6b   : > { %671 = dma.hbm_to_vmem [thread:$0]  (!%p1027_p11), %s1036_s7, 256, %s1071_s29, %s1073_s25, %s1206_s6, %s1206_s6, %s1205_s9  }
  0x6c   : > { %p1207_p0 = scmp.ne.s32.totalorder %s1198_s20, 0 }
  0x6d   : > { %s1105_s2 = sand.u32 (!%p1207_p0), 1, %s881_s13   ;;  %p1208_p4 = scmp.ne.s32.totalorder (!%p1207_p0), %s1196_s18, 0 }
  0x6e   : > { %196 = sbr.rel (%p1207_p0) target bundleno = 652 (0x28c), region = 32  ;;  %s1108_s10 = sshll.u32 (!%p1207_p0), %s1105_s2, 4 }
  0x6f   : > { %s199_s4 = scalar_lea.sflag (!%p1207_p0), [#allocation3], %s1105_s2  ;;  %s202_s11 = scalar_lea.vmem (!%p1207_p0), [#allocation2], %s1108_s10 }
  0x75   : > { %860 = dma.done.wait (%p1208_p4), %s199_s4, 256  }
  0x76   : > { %862 = vsyncadd (%p1208_p4), %s199_s4, 4294967040  ;;  %s207_s20 = sand.u32 1, %s940_s16   ;;  %s211_s9 = scalar_lea.vmem [#allocation5], %s1108_s10 }
  0x77   : > { %s208_s7 = scalar_lea.sflag [#allocation6], %s207_s20 }
  0x78   : > { %864 = dma.done.wait (%p1208_p4), %s208_s7, 256  }
  0x79   : > { %866 = vsyncadd (%p1208_p4), %s208_s7, 4294967040  ;;  %p1209_p11 = scmp.eq.s32.totalorder %s940_s16, 0 }
  0x7b   : > { %868 = dma.done.wait (%p1209_p11), [#allocation6], 512   ;;  %p1210_p13 = pmov %p1209_p11 }
  0x7c   : > { %vm249_vm0 = vcmask 261120   ;;  %v245_v0 = vld [vmem:[#allocation7] sm:$0xff]  ;;  %v246_v1 = vld [vmem:[#allocation7 + $0x8] sm:$0xff]  ;;  %v247_v2 = vld [vmem:[#allocation7 + $0x10] sm:$0xff]  ;;  %vm333_vm1 = vcmask 130048   ;;  %s610_s18 = sshll.u32 %s940_s16, 8 }
  0x7d   : > { %870 = vsyncadd (%p1210_p13), [#allocation6], 4294966784  ;;  %v639_v3 = vpack.c.bf16 %v246_v1, %v245_v0  ;;  %v248_v4 = vld [vmem:[#allocation7 + $0x18] sm:$0xff]  ;;  %v243_v5 = vld [vmem:[%s202_s11] sm:$0xff]  ;;  %s242_s6 = scalar_lea.vmem [#allocation8], %s1108_s10  ;;  %s1135_s23 = scalar_lea.hbm %s1186_s3, %s610_s18 }
  0x7e   : > { %v643_v6 = vpack.c.bf16 %v248_v4, %v247_v2  ;;  %629 = vmatprep.mubr.msk.f32.mxu0 %vm249_vm0, %v243_v5  ;;  %v244_v7 = vld [vmem:[%s202_s11 + $0x8] sm:$0xff]  ;;  %v331_v8 = vld [vmem:[%s211_s9] sm:$0xff]  ;;  %s479_s29 = sshll.u32 %s242_s6, 4  ;;  %s466_s16 = scalar_lea.sflag [#allocation4], %s1105_s2  ;;  %s1137_s29 = int_to_ptr.vmem [resolvable:$true] %s479_s29 }
  0x7f   : > { %640 = vmatprep.subr.bf16.mxu0 %v639_v3  ;;  %636 = vmatprep.mubr.msk.f32.mxu1 %vm333_vm1, %v331_v8  ;;  %v332_v12 = vld [vmem:[%s211_s9 + $0x8] sm:$0xff]  ;;  %s815_s27 = scalar_lea.vmem %s1137_s29, 256  ;;  %s896_s5 = smov [#allocation8]  }
  0x80   : > { %642 = vmatpush3.bf16.msra.mxu0 %v639_v3  ;;  %p816_p3 = scmp.ne.s32.totalorder %s1137_s29, %s815_s27  ;;  %s819_s8 = sshll.u32 %s896_s5, 4  ;;  %s820_s8 = int_to_ptr.vmem [resolvable:$false] %s819_s8 }
  0x81   : > { %644 = vmatprep.subr.bf16.mxu0 %v643_v6  ;;  %s821_s28 = scalar_lea.vmem %s820_s8, 512  ;;  %p822_p1 = scmp.lt.s32.totalorder %s1137_s29, %s820_s8 }
  0x82   : > { %p817_p7 = pnand %p816_p3, %p1013_p12  ;;  %p823_p5 = scmp.lt.s32.totalorder %s821_s28, %s815_s27 }
  0x84   : > { %646 = vmatpush3.bf16.msra.mxu0 %v643_v6  ;;  %p818_p9 = pneg %p817_p7  ;;  %p824_p2 = por %p823_p5, %p822_p1 }
  0x86   : > { %p825_p6 = pnand %p824_p2, %p818_p9 }
  0x87   : > { %630 = vmatmul.mubr.msk.f32.vlgmr.msra.gmra.mrb[0].mxu0 %vm249_vm0, %v244_v7 }
 0x15a   : > { %v631_v9 = vpop.f32.mrb[0].mxu0 }
 0x15b   : > { %v322_v10 = vpop.f32.mrb[1].mxu0 }
 0x15c   : > { %v647_v11 = vpack.c.bf16 %v631_v9, %v322_v10 }
 0x15e   : > { %648 = vmatprep.subr.bf16.mxu1 %v647_v11 }
 0x15f   : > { %650 = vmatpush3.bf16.msra.mxu1 %v647_v11 }
 0x162   : > { %637 = vmatmul.mubr.msk.f32.vlgmr.msra.gmra.mrb[0].mxu1 %vm333_vm1, %v332_v12 }
 0x235   : > { %v638_v13 = vpop.f32.mrb[0].mxu1 }
 0x236   : > { %v416_v14 = vmax.f32 %v638_v13, 0.0  ;;  %v406_v15 = vpop.f32.mrb[1].mxu1 }
 0x237   : > { %v415_v16 = vmax.f32 %v406_v15, 0.0 }
 0x238   : > { %v418_v17 = vsel %vm249_vm0, %v416_v14, 0.0 }
 0x239   : > { %v417_v18 = vsel %vm249_vm0, %v415_v16, 0.0 }
 0x23a   : > { %v419_v19 = vadd.f32 %v418_v17, %v417_v18 }
 0x23c   : > { %v420_v20 = vrot.slane %v419_v19, 4 }
 0x23e   : > { %v421_v21 = vadd.f32 %v420_v20, %v419_v19 }
 0x240   : > { %v422_v22 = vrot.slane %v421_v21, 2 }
 0x242   : > { %v423_v23 = vadd.f32 %v422_v22, %v421_v21 }
 0x244   : > { %v424_v24 = vrot.slane %v423_v23, 1 }
 0x246   : > { %v425_v25 = vadd.f32 %v424_v24, %v423_v23 }
 0x248   : > { %v427_v26 = vmul.f32 0.0625, %v425_v25 }
 0x24a   : > { %v428_v27 = vadd.f32 1e-06, %v427_v26 }
 0x24c   : > { %717 = vrcp.f32 %v428_v27 }
 0x256   : > { %v718_v28 = vpop.eup %717 }
 0x257   : > { %v431_v29 = vmul.f32 %v718_v28, %v415_v16  ;;  %v432_v30 = vmul.f32 %v718_v28, %v416_v14 }
 0x259   : > { %v435_v31 = vand.u32 2147483647, %v431_v29  ;;  %v436_v32 = vand.u32 2147483647, %v432_v30  ;;  %v433_v51 = vmax.f32 %v431_v29, 0.0  ;;  %v434_v54 = vmax.f32 %v432_v30, 0.0 }
 0x25b   : > { %v437_v33 = vsub.f32 0.0, %v435_v31  ;;  %v438_v34 = vsub.f32 0.0, %v436_v32 }
 0x25d   : > { %v439_v35 = vmul.f32 1.442695, %v437_v33  ;;  %v441_v36 = vmul.f32 1.442695, %v438_v34 }
 0x25f   : > { %719 = vpow2.f32 %v439_v35 }
 0x260   : > { %721 = vpow2.f32 %v441_v36 }
 0x269   : > { %v720_v37 = vpop.eup %719 }
 0x26a   : > { %v722_v38 = vpop.eup %721  ;;  %v443_v39 = vadd.f32 1.0, %v720_v37  ;;  %v446_v41 = vmul.f32 -0.5, %v720_v37  ;;  %v449_v44 = vand.u32 2147483647, %v720_v37 }
 0x26b   : > { %v452_v40 = vadd.f32 1.0, %v722_v38  ;;  %v455_v42 = vmul.f32 -0.5, %v722_v38  ;;  %v458_v46 = vand.u32 2147483647, %v722_v38 }
 0x26c   : > { %723 = vlog2.f32 %v443_v39  ;;  %v447_v43 = vadd.f32 1.0, %v446_v41  ;;  %vm450_vm2 = vcmp.lt.f32.partialorder %v449_v44, 0.0004427343 }
 0x26d   : > { %725 = vlog2.f32 %v452_v40  ;;  %v456_v45 = vadd.f32 1.0, %v455_v42  ;;  %vm459_vm3 = vcmp.lt.f32.partialorder %v458_v46, 0.0004427343 }
 0x26e   : > { %v448_v50 = vmul.f32 %v720_v37, %v447_v43 }
 0x26f   : > { %v457_v53 = vmul.f32 %v722_v38, %v456_v45 }
 0x276   : > { %v724_v47 = vpop.eup %723 }
 0x277   : > { %v726_v48 = vpop.eup %725  ;;  %v445_v49 = vmul.f32 0.6931472, %v724_v47 }
 0x278   : > { %v454_v52 = vmul.f32 0.6931472, %v726_v48 }
 0x279   : > { %v451_v55 = vsel %vm450_vm2, %v448_v50, %v445_v49 }
 0x27a   : > { %v461_v56 = vadd.f32 %v451_v55, %v433_v51  ;;  %v460_v57 = vsel %vm459_vm3, %v457_v53, %v454_v52 }
 0x27b   : > { %v462_v58 = vadd.f32 %v460_v57, %v434_v54 }
 0x27c   : > { %463 = vst.msk [vmem:[%s242_s6] sm:$0xff] %vm249_vm0, %v461_v56 }
 0x27d   : > { %464 = vst.msk [vmem:[%s242_s6 + $0x8] sm:$0xff] %vm249_vm0, %v462_v58 }
 0x27e   : > { %828 = shalt.err (!%p825_p6)
}
 0x27f   : > { %s829_s22 = scalar_lea.hbm %s1135_s23, 256  ;;  %s833_s10 = scalar_lea.hbm %s1186_s3, 512 }
 0x280   : > { %p830_p8 = scmp.ne.s32.totalorder %s1135_s23, %s829_s22  ;;  %p834_p4 = scmp.lt.u32.totalorder %s1135_s23, %s1186_s3 }
 0x281   : > { %p835_p11 = scmp.lt.u32.totalorder %s833_s10, %s829_s22  ;;  %p837_p3 = scmp.lt.u32.totalorder %s829_s22, %s1135_s23 }
 0x282   : > { %p831_p10 = pnand %p830_p8, %p1013_p12 }
 0x283   : > { %p836_p13 = por %p835_p11, %p834_p4 }
 0x284   : > { %p832_p0 = pneg %p831_p10 }
 0x285   : > { %p838_p7 = por %p837_p3, %p836_p13 }
 0x287   : > { %p839_p9 = pnand %p838_p7, %p832_p0 }
 0x289   : > { %842 = shalt.err (!%p839_p9)
}
 0x28a   : > { %s897_s20 = smov 128   ;;  %s898_s7 = smov 8  }
 0x28b   : > { %659 = dma.vmem_to_hbm [thread:$0]  (%p1013_p12), %s1137_s29, 256, %s1135_s23, %s466_s16, %s897_s20, %s897_s20, %s898_s7  }
 0x28c PF: > { %s494_s9 = sand.u32 1, %s877_s12   ;;  %p1211_p1 = scmp.ne.s32.totalorder %s1197_s19, 0 }
 0x28d   : > { %p1212_p5 = scmp.ge.s32.totalorder %s889_s15, 2  ;;  %s495_s18 = scalar_lea.sflag [#allocation4], %s494_s9 }
 0x28f   : > { %p673_p2 = pnand %p1212_p5, %p1211_p1 }
 0x291   : > { %872 = dma.done.wait (!%p673_p2), %s495_s18, 256  }
 0x292   : > { %874 = vsyncadd (!%p673_p2), %s495_s18, 4294967040  ;;  %p19_p6 = scmp.ge.s32.totalorder %s975_s24, 4   ;;  %s1213_s12 = smov %s881_s13 }
 0x293   : > { %s1214_s13 = smov %s885_s14  ;;  %s1215_s14 = smov %s1009_s17 }
 0x294   : > { %s1216_s15 = smov %s975_s24  ;;  %21 = sbr.rel (!%p19_p6) target bundleno = 10 (0xa), region = 94 }
 0x29b   :  { %500 = vsyncpa [#allocation3], 1 }
 0x29c   :  { %502 = vsyncpa [#allocation3 + $0x1], 1 }
 0x29d   :  { %503 = vsyncpa [#allocation6], 1 }
 0x29e   :  { %505 = vsyncpa [#allocation6 + $0x1], 1 }
 0x29f   :  { %506 = vsyncpa [#allocation4], 1 }
 0x2a0   :  { %508 = vsyncpa [#allocation4 + $0x1], 1 }

</bundles_post_ra>
